<compile_context>
chip_gen: v5e
topology: v5e:2x2
jax: 0.10.0
libtpu: 0.0.40
codegen_flags: <defaults>
</compile_context>

<pallas_src>
import functools

import jax
import jax.numpy as jnp
from jax.experimental import pallas as pl
from jax.experimental.pallas import tpu as pltpu

GAMMA = 2.0  # matches FocalLoss(gamma=2.0)
# TODO(synk): per-class `weight` vector (weight=None in the default module) is
# not implemented; with weights the mean becomes sum(w_t * l_t) / sum(w_t).
# NOTE: small-C lane packing (C=32 uses 32/128 lanes) intentionally not done;
# the kernel is HBM-read-bound after the restructure, so packing adds no win.


def _round_up(x, m):
    return (x + m - 1) // m * m


def _focal_loss_kernel(x_ref, t_ref, out_ref, *, gamma, total_n, tile_rows,
                       needs_mask):
    """Writes the per-row focal-loss column for this tile of rows."""
    x = x_ref[...].astype(jnp.float32)                     # (TM, C) logits
    # log-softmax pieces along the class (lane) axis — only one full-tile exp.
    m = jnp.max(x, axis=-1, keepdims=True)
    shifted = x - m                                        # (TM, C)
    lse = jnp.log(jnp.sum(jnp.exp(shifted), axis=-1, keepdims=True))  # (TM,1)

    # Gather-first: pull the target column out with a lane reduction, then do
    # the focal weighting on the (TM, 1) column only.
    t = t_ref[...]                                         # (TM, 1) int32
    cls = jax.lax.broadcasted_iota(jnp.int32, shifted.shape, dimension=1)
    picked_shifted = jnp.sum(jnp.where(cls == t, shifted, 0.0),
                             axis=-1, keepdims=True)       # (TM, 1)
    picked_logp = picked_shifted - lse                     # (TM, 1) = log p_t
    p_t = jnp.exp(picked_logp)                             # (TM, 1)
    one_minus = 1.0 - p_t
    if gamma == 2.0:
        w = one_minus * one_minus        # static gamma=2 -> plain square on VPU
    else:
        w = one_minus ** gamma           # general (EUP pow) fallback
    loss = -(w * picked_logp)                              # (TM, 1)

    if needs_mask:
        row = (jax.lax.broadcasted_iota(jnp.int32, loss.shape, dimension=0)
               + pl.program_id(0) * tile_rows)
        loss = jnp.where(row < total_n, loss, 0.0)         # zero padded rows

    out_ref[...] = loss


def focal_loss(logits, targets, *, gamma=GAMMA, tile_rows=None,
               vmem_tile_budget_bytes=4 << 20):
    """logits: (N, C) float; targets: (N,) int. Returns scalar mean focal loss."""
    n, c = logits.shape
    if tile_rows is None:
        # ~6 f32 tile-sized live arrays (double-buffered input + temporaries);
        # 4 MiB/tile keeps us well inside v7x's 32 MiB scoped VMEM default.
        rows = vmem_tile_budget_bytes // (c * 4 * 6)
        rows = max(8, rows - rows % 8)
        tile_rows = int(min(rows, _round_up(n, 8)))
    assert tile_rows % 8 == 0

    n_pad = _round_up(n, tile_rows)
    if n_pad != n:
        logits = jnp.pad(logits, ((0, n_pad - n), (0, 0)))
        targets = jnp.pad(targets, ((0, n_pad - n),))
    # Keep logits in their incoming dtype (e.g. bf16) for the DMA; the kernel
    # upcasts to f32 internally.
    t2d = targets.astype(jnp.int32).reshape(n_pad, 1)

    kernel = functools.partial(
        _focal_loss_kernel, gamma=gamma, total_n=n, tile_rows=tile_rows,
        needs_mask=(n_pad != n))

    per_row = pl.pallas_call(
        kernel,
        out_shape=jax.ShapeDtypeStruct((n_pad, 1), jnp.float32),
        grid_spec=pltpu.PrefetchScalarGridSpec(
            num_scalar_prefetch=0,
            grid=(n_pad // tile_rows,),
            in_specs=[
                pl.BlockSpec((tile_rows, c), lambda i: (i, 0)),
                pl.BlockSpec((tile_rows, 1), lambda i: (i, 0)),
            ],
            out_specs=pl.BlockSpec((tile_rows, 1), lambda i: (i, 0)),
        ),
        compiler_params=pltpu.CompilerParams(
            dimension_semantics=("parallel",),  # no accumulator -> both TCs ok
        ),
    )(logits, t2d)

    # Mean over the real N rows (padded rows were masked to zero in-kernel).
    return jnp.sum(per_row) / jnp.float32(n)


def _focal_loss_ref(logits, targets, gamma=GAMMA):
    """Pure-JAX reference mirroring the PyTorch module (weight=None, mean)."""
    logp = jax.nn.log_softmax(logits.astype(jnp.float32), axis=-1)
    p = jnp.exp(logp)
    focal = ((1.0 - p) ** gamma) * logp
    picked = jnp.take_along_axis(focal, targets[:, None].astype(jnp.int32),
                                 axis=-1)
    return jnp.mean(-picked)


if __name__ == "__main__":
    key = jax.random.PRNGKey(0)
    kx, kt = jax.random.split(key)
    N, C = 128, 32
    logits = jax.random.normal(kx, (N, C), dtype=jnp.float32)
    targets = jax.random.randint(kt, (N,), 0, C, dtype=jnp.int32)

    loss = focal_loss(logits, targets)
    loss = jax.block_until_ready(loss)

    ref = _focal_loss_ref(logits, targets)
    assert jnp.allclose(loss, ref, atol=1e-5, rtol=1e-5), (loss, ref)

    print("KERNEL_OK")
</pallas_src>

<mosaic_0001>
module attributes {stable_mosaic.version = 11 : i64} {
  func.func @_focal_loss_kernel(%arg0: i32, %arg1: memref<128x32xf32, #tpu.memory_space<vmem>>, %arg2: memref<128x1xi32, #tpu.memory_space<vmem>>, %arg3: memref<128x1xf32, #tpu.memory_space<vmem>>) attributes {dimension_semantics = [#tpu.dimension_semantics<parallel>], iteration_bounds = array<i64: 1>, scalar_prefetch = 0 : i64, scratch_operands = 0 : i64, tpu.core_type = #tpu.core_type<tc>, window_params = [{transform_indices = @transform_0, window_bounds = array<i64: 128, 32>}, {transform_indices = @transform_1, window_bounds = array<i64: 128, 1>}, {transform_indices = @transform_2, window_bounds = array<i64: 128, 1>}]} {
    %c0 = arith.constant 0 : index
    %c0_0 = arith.constant 0 : index
    %0 = vector.load %arg1[%c0, %c0_0] : memref<128x32xf32, #tpu.memory_space<vmem>>, vector<128x32xf32>
    %cst = arith.constant dense<0xFF800000> : vector<128xf32>
    %1 = vector.multi_reduction <maximumf>, %0, %cst [1] : vector<128x32xf32> to vector<128xf32>
    %2 = vector.shape_cast %1 : vector<128xf32> to vector<128x1xf32>
    %3 = vector.broadcast %2 : vector<128x1xf32> to vector<128x32xf32>
    %4 = arith.subf %0, %3 : vector<128x32xf32>
    %5 = math.exp %4 : vector<128x32xf32>
    %cst_1 = arith.constant dense<0.000000e+00> : vector<128xf32>
    %6 = vector.multi_reduction <add>, %5, %cst_1 [1] : vector<128x32xf32> to vector<128xf32>
    %7 = vector.shape_cast %6 : vector<128xf32> to vector<128x1xf32>
    %8 = math.log %7 : vector<128x1xf32>
    %c0_2 = arith.constant 0 : index
    %c0_3 = arith.constant 0 : index
    %9 = vector.load %arg2[%c0_2, %c0_3] : memref<128x1xi32, #tpu.memory_space<vmem>>, vector<128x1xi32>
    %10 = tpu.iota {dimensions = array<i32: 1>} : vector<128x32xi32>
    %11 = vector.broadcast %9 : vector<128x1xi32> to vector<128x32xi32>
    %12 = arith.cmpi eq, %10, %11 : vector<128x32xi32>
    %cst_4 = arith.constant 0.000000e+00 : f32
    %13 = vector.broadcast %cst_4 : f32 to vector<128x32xf32>
    %14 = arith.select %12, %4, %13 : vector<128x32xi1>, vector<128x32xf32>
    %cst_5 = arith.constant dense<0.000000e+00> : vector<128xf32>
    %15 = vector.multi_reduction <add>, %14, %cst_5 [1] : vector<128x32xf32> to vector<128xf32>
    %16 = vector.shape_cast %15 : vector<128xf32> to vector<128x1xf32>
    %17 = arith.subf %16, %8 : vector<128x1xf32>
    %18 = math.exp %17 : vector<128x1xf32>
    %cst_6 = arith.constant 1.000000e+00 : f32
    %19 = vector.broadcast %cst_6 : f32 to vector<128x1xf32>
    %20 = arith.subf %19, %18 : vector<128x1xf32>
    %21 = arith.mulf %20, %20 : vector<128x1xf32>
    %22 = arith.mulf %21, %17 : vector<128x1xf32>
    %cst_7 = arith.constant 0.000000e+00 : f32
    %23 = vector.broadcast %cst_7 : f32 to vector<128x1xf32>
    %24 = arith.subf %23, %22 : vector<128x1xf32>
    %c0_8 = arith.constant 0 : index
    %c0_9 = arith.constant 0 : index
    %25 = vector.load %arg3[%c0_8, %c0_9] : memref<128x1xf32, #tpu.memory_space<vmem>>, vector<128x1xf32>
    tpu.vector_store %arg3[%c0_8, %c0_9], %24 {strides = array<i32>} : memref<128x1xf32, #tpu.memory_space<vmem>>, vector<128x1xf32>,
    return
  }
  func.func @transform_0(%arg0: i32) -> (i32, i32) {
    %c0_i32 = arith.constant 0 : i32
    %c0_i32_0 = arith.constant 0 : i32
    return %arg0, %c0_i32 : i32, i32
  }
  func.func @transform_1(%arg0: i32) -> (i32, i32) {
    %c0_i32 = arith.constant 0 : i32
    %c0_i32_0 = arith.constant 0 : i32
    return %arg0, %c0_i32 : i32, i32
  }
  func.func @transform_2(%arg0: i32) -> (i32, i32) {
    %c0_i32 = arith.constant 0 : i32
    %c0_i32_0 = arith.constant 0 : i32
    return %arg0, %c0_i32 : i32, i32
  }
}

</mosaic_0001>

<bundles_post_ra>
// kernel: tpu_custom_call.1
= control target key start
LH: loop header
LB: loop body
LE: loop exit
PB: predicated region body
PF: predicated region fallthrough
CT: control target
= control target key end

     0   :  { %vm27_vm0 = vcmask 261120   ;;  %v583_v14 = vmov 0   ;;  %s980_s0 = inlined_call_operand.vmem [shape: f32[128,32], index: 0, kind: input, shape index: {}]   ;;  %s981_s1 = inlined_call_operand.vmem [shape: s32[128,1], index: 1, kind: input, shape index: {}]   ;;  %s982_s2 = inlined_call_operand.vmem [shape: f32[128,1], index: 2, kind: output, shape index: {}]  }
   0x1   :  { %v602_v0 = vld [vmem:[%s980_s0 + $0x20] sm:$0xff]  ;;  %v607_v1 = vld [vmem:[%s980_s0 + $0x10] sm:$0xff]  ;;  %v623_v6 = vld [vmem:[%s980_s0 + $0x28] sm:$0xff]  ;;  %484 = vset.pattern.permute.xlu2 %v583_v14  ;;  %486 = vset.pattern.permute.xlu1 %v583_v14 }
   0x2   :  { %v612_v2 = vld [vmem:[%s980_s0] sm:$0xff]  ;;  %v40_v3 = vsel %vm27_vm0, %v602_v0, -inf  ;;  %v34_v4 = vsel %vm27_vm0, %v607_v1, -inf  ;;  %v628_v7 = vld [vmem:[%s980_s0 + $0x18] sm:$0xff]  ;;  %v633_v8 = vld [vmem:[%s980_s0 + $0x8] sm:$0xff]  ;;  %v43_v9 = vsel %vm27_vm0, %v623_v6, -inf  ;;  %485 = vset.pattern.permute.xlu0 %v583_v14 }
   0x3   :  { %v28_v5 = vsel %vm27_vm0, %v612_v2, -inf  ;;  %41 = vmax.xlane.f32.xlu2 %v40_v3  ;;  %35 = vmax.xlane.f32.xlu1 %v34_v4  ;;  %v37_v10 = vsel %vm27_vm0, %v628_v7, -inf  ;;  %v31_v11 = vsel %vm27_vm0, %v633_v8, -inf  ;;  %v644_v12 = vld [vmem:[%s980_s0 + $0x40] sm:$0xff]  ;;  %v649_v13 = vld [vmem:[%s980_s0 + $0x38] sm:$0xff]  ;;  %v654_v15 = vld [vmem:[%s980_s0 + $0x30] sm:$0xff] }
   0x4   :  { %29 = vmax.xlane.f32.xlu0 %v28_v5  ;;  %v52_v16 = vsel %vm27_vm0, %v644_v12, -inf  ;;  %v49_v17 = vsel %vm27_vm0, %v649_v13, -inf  ;;  %v46_v18 = vsel %vm27_vm0, %v654_v15, -inf  ;;  %v665_v19 = vld [vmem:[%s980_s0 + $0x58] sm:$0xff]  ;;  %v670_v20 = vld [vmem:[%s980_s0 + $0x50] sm:$0xff]  ;;  %v675_v21 = vld [vmem:[%s980_s0 + $0x48] sm:$0xff] }
   0x5   :  { %v61_v22 = vsel %vm27_vm0, %v665_v19, -inf  ;;  %v58_v23 = vsel %vm27_vm0, %v670_v20, -inf  ;;  %v55_v24 = vsel %vm27_vm0, %v675_v21, -inf  ;;  %v686_v25 = vld [vmem:[%s980_s0 + $0x70] sm:$0xff]  ;;  %v691_v26 = vld [vmem:[%s980_s0 + $0x68] sm:$0xff]  ;;  %v696_v27 = vld [vmem:[%s980_s0 + $0x60] sm:$0xff] }
   0x6   :  { %v70_v28 = vsel %vm27_vm0, %v686_v25, -inf  ;;  %v67_v29 = vsel %vm27_vm0, %v691_v26, -inf  ;;  %v64_v30 = vsel %vm27_vm0, %v696_v27, -inf  ;;  %v707_v31 = vld [vmem:[%s980_s0 + $0x78] sm:$0xff]  ;;  %v204_v33 = vld [vmem:[%s981_s1] sm:$0xff]  ;;  %v206_v34 = vld [vmem:[%s981_s1 + $0x10] sm:$0xff] }
   0x7   :  { %v73_v32 = vsel %vm27_vm0, %v707_v31, -inf  ;;  %v205_v35 = vld [vmem:[%s981_s1 + $0x8] sm:$0xff]  ;;  %v207_v36 = vld [vmem:[%s981_s1 + $0x18] sm:$0xff]  ;;  %v212_v38 = vld [vmem:[%s981_s1 + $0x40] sm:$0xff] }
   0x8   :  { %v209_v37 = vld [vmem:[%s981_s1 + $0x28] sm:$0xff]  ;;  %v208_v39 = vld [vmem:[%s981_s1 + $0x20] sm:$0xff]  ;;  %v211_v40 = vld [vmem:[%s981_s1 + $0x38] sm:$0xff] }
   0x9   :  { %v210_v41 = vld [vmem:[%s981_s1 + $0x30] sm:$0xff]  ;;  %v213_v43 = vld [vmem:[%s981_s1 + $0x48] sm:$0xff] }
   0xa   :  { %v214_v42 = vld [vmem:[%s981_s1 + $0x50] sm:$0xff] }
   0xb   :  { %44 = vmax.xlane.f32.xlu2 %v43_v9  ;;  %38 = vmax.xlane.f32.xlu1 %v37_v10 }
   0xc   :  { %32 = vmax.xlane.f32.xlu0 %v31_v11 }
  0x13   :  { %53 = vmax.xlane.f32.xlu2 %v52_v16  ;;  %50 = vmax.xlane.f32.xlu1 %v49_v17 }
  0x14   :  { %47 = vmax.xlane.f32.xlu0 %v46_v18 }
  0x1b   :  { %62 = vmax.xlane.f32.xlu2 %v61_v22  ;;  %59 = vmax.xlane.f32.xlu1 %v58_v23 }
  0x1c   :  { %56 = vmax.xlane.f32.xlu0 %v55_v24 }
  0x23   :  { %71 = vmax.xlane.f32.xlu2 %v70_v28  ;;  %68 = vmax.xlane.f32.xlu1 %v67_v29 }
  0x24   :  { %65 = vmax.xlane.f32.xlu0 %v64_v30 }
  0x2c   :  { %74 = vmax.xlane.f32.xlu0 %v73_v32 }
  0x3b   :  { %223 = vperm.xlu2 %484, %v204_v33  }
  0x3c   :  { %229 = vperm.xlu1 %486, %v206_v34  }
  0x40   :  { %226 = vperm.xlu0 %485, %v205_v35  }
  0x43   :  { %232 = vperm.xlu2 %484, %v207_v36  }
  0x44   :  { %238 = vperm.xlu1 %486, %v209_v37  }
  0x48   :  { %247 = vperm.xlu0 %485, %v212_v38  }
  0x4b   :  { %235 = vperm.xlu2 %484, %v208_v39  }
  0x4c   :  { %244 = vperm.xlu1 %486, %v211_v40  }
  0x53   :  { %241 = vperm.xlu2 %484, %v210_v41  }
  0x54   :  { %253 = vperm.xlu1 %486, %v214_v42  }
  0x5b   :  { %250 = vperm.xlu2 %484, %v213_v43  }
  0x76   :  { %v42_v44 = vpop.xlane.xlu2 %41  ;;  %v36_v45 = vpop.xlane.xlu1 %35 }
  0x77   :  { %v745_v46 = vsub.f32 %v607_v1, %v36_v45  ;;  %v30_v47 = vpop.xlane.xlu0 %29  ;;  %v764_v60 = vsub.f32 %v602_v0, %v42_v44 }
  0x78   :  { %v748_v48 = vsub.f32 %v612_v2, %v30_v47 }
  0x79   :  { %v96_v49 = vmul.f32 1.442695, %v745_v46  ;;  %v100_v2 = vmul.f32 1.442695, %v764_v60 }
  0x7a   :  { %v92_v50 = vmul.f32 1.442695, %v748_v48 }
  0x7b   :  { %487 = vpow2.f32 %v96_v49 }
  0x7c   :  { %489 = vpow2.f32 %v92_v50 }
  0x7e   :  { %v45_v51 = vpop.xlane.xlu2 %44  ;;  %v39_v52 = vpop.xlane.xlu1 %38 }
  0x7f   :  { %v753_v53 = vsub.f32 %v623_v6, %v45_v51  ;;  %v756_v54 = vsub.f32 %v628_v7, %v39_v52  ;;  %v33_v55 = vpop.xlane.xlu0 %32 }
  0x80   :  { %v759_v56 = vsub.f32 %v633_v8, %v33_v55 }
  0x81   :  { %v102_v57 = vmul.f32 1.442695, %v753_v53  ;;  %v98_v58 = vmul.f32 1.442695, %v756_v54  ;;  %v488_v59 = vpop.eup %487 }
  0x82   :  { %v94_v61 = vmul.f32 1.442695, %v759_v56  ;;  %v490_v62 = vpop.eup %489  ;;  %v130_v63 = vsel %vm27_vm0, %v488_v59, 0.0 }
  0x83   :  { %491 = vpow2.f32 %v102_v57  ;;  %131 = vadd.xlane.f32.xlu0 %v130_v63  ;;  %v124_v1 = vsel %vm27_vm0, %v490_v62, 0.0 }
  0x84   :  { %493 = vpow2.f32 %v98_v58  ;;  %125 = vadd.xlane.f32.xlu1 %v124_v1 }
  0x85   :  { %495 = vpow2.f32 %v94_v61 }
  0x86   :  { %v54_v3 = vpop.xlane.xlu2 %53  ;;  %v51_v4 = vpop.xlane.xlu1 %50  ;;  %497 = vpow2.f32 %v100_v2 }
  0x87   :  { %v771_v5 = vsub.f32 %v644_v12, %v54_v3  ;;  %v48_v0 = vpop.xlane.xlu0 %47  ;;  %v779_v11 = vsub.f32 %v649_v13, %v51_v4  ;;  %v215_v3 = vld [vmem:[%s981_s1 + $0x58] sm:$0xff]  ;;  %v218_v4 = vld [vmem:[%s981_s1 + $0x70] sm:$0xff] }
  0x88   :  { %v774_v6 = vsub.f32 %v654_v15, %v48_v0  ;;  %v216_v0 = vld [vmem:[%s981_s1 + $0x60] sm:$0xff] }
  0x89   :  { %v492_v7 = vpop.eup %491  ;;  %v108_v8 = vmul.f32 1.442695, %v771_v5  ;;  %v106_v17 = vmul.f32 1.442695, %v779_v11 }
  0x8a   :  { %v494_v9 = vpop.eup %493  ;;  %v104_v10 = vmul.f32 1.442695, %v774_v6  ;;  %v139_v14 = vsel %vm27_vm0, %v492_v7, 0.0  ;;  %v217_v7 = vld [vmem:[%s981_s1 + $0x68] sm:$0xff] }
  0x8b   :  { %v496_v16 = vpop.eup %495  ;;  %499 = vpow2.f32 %v108_v8  ;;  %v133_v12 = vsel %vm27_vm0, %v494_v9, 0.0  ;;  %140 = vadd.xlane.f32.xlu0 %v139_v14  ;;  %v219_v8 = vld [vmem:[%s981_s1 + $0x78] sm:$0xff] }
  0x8c   :  { %501 = vpow2.f32 %v104_v10  ;;  %v127_v15 = vsel %vm27_vm0, %v496_v16, 0.0  ;;  %134 = vadd.xlane.f32.xlu1 %v133_v12  ;;  %v498_v24 = vpop.eup %497  ;;  %v220_v16 = vlaneseq }
  0x8d   :  { %128 = vadd.xlane.f32.xlu2 %v127_v15  ;;  %503 = vpow2.f32 %v106_v17 }
  0x8e   :  { %v63_v18 = vpop.xlane.xlu2 %62  ;;  %v60_v22 = vpop.xlane.xlu1 %59  ;;  %v839_v15 = vand.u32 127, %v220_v16 }
  0x8f   :  { %v786_v23 = vsub.f32 %v665_v19, %v63_v18  ;;  %v57_v13 = vpop.xlane.xlu0 %56  ;;  %v794_v34 = vsub.f32 %v670_v20, %v60_v22 }
  0x90   :  { %v789_v28 = vsub.f32 %v675_v21, %v57_v13  ;;  %v136_v21 = vsel %vm27_vm0, %v498_v24, 0.0 }
  0x91   :  { %v500_v29 = vpop.eup %499  ;;  %v114_v30 = vmul.f32 1.442695, %v786_v23  ;;  %v112_v36 = vmul.f32 1.442695, %v794_v34 }
  0x92   :  { %v502_v32 = vpop.eup %501  ;;  %v110_v33 = vmul.f32 1.442695, %v789_v28  ;;  %v148_v35 = vsel %vm27_vm0, %v500_v29, 0.0 }
  0x93   :  { %505 = vpow2.f32 %v114_v30  ;;  %v142_v19 = vsel %vm27_vm0, %v502_v32, 0.0  ;;  %149 = vadd.xlane.f32.xlu0 %v148_v35  ;;  %v504_v20 = vpop.eup %503 }
  0x94   :  { %507 = vpow2.f32 %v110_v33  ;;  %143 = vadd.xlane.f32.xlu1 %v142_v19 }
  0x95   :  { %137 = vadd.xlane.f32.xlu2 %v136_v21  ;;  %509 = vpow2.f32 %v112_v36 }
  0x96   :  { %v72_v37 = vpop.xlane.xlu2 %71  ;;  %v69_v41 = vpop.xlane.xlu1 %68 }
  0x97   :  { %v801_v38 = vsub.f32 %v686_v25, %v72_v37  ;;  %v66_v39 = vpop.xlane.xlu0 %65  ;;  %v810_v49 = vsub.f32 %v691_v26, %v69_v41 }
  0x98   :  { %v804_v40 = vsub.f32 %v696_v27, %v66_v39  ;;  %v145_v27 = vsel %vm27_vm0, %v504_v20, 0.0 }
  0x99   :  { %v506_v42 = vpop.eup %505  ;;  %v120_v43 = vmul.f32 1.442695, %v801_v38  ;;  %v118_v50 = vmul.f32 1.442695, %v810_v49 }
  0x9a   :  { %v508_v44 = vpop.eup %507  ;;  %v116_v45 = vmul.f32 1.442695, %v804_v40  ;;  %v157_v47 = vsel %vm27_vm0, %v506_v42, 0.0 }
  0x9b   :  { %511 = vpow2.f32 %v120_v43  ;;  %v151_v25 = vsel %vm27_vm0, %v508_v44, 0.0  ;;  %158 = vadd.xlane.f32.xlu0 %v157_v47  ;;  %v510_v52 = vpop.eup %509 }
  0x9c   :  { %513 = vpow2.f32 %v116_v45  ;;  %152 = vadd.xlane.f32.xlu1 %v151_v25  ;;  %v154_v62 = vsel %vm27_vm0, %v510_v52, 0.0 }
  0x9d   :  { %146 = vadd.xlane.f32.xlu2 %v145_v27  ;;  %515 = vpow2.f32 %v118_v50 }
  0x9e   :  { %v224_v9 = vpop.permute.xlu2 %223 }
  0x9f   :  { %v75_v51 = vpop.xlane.xlu0 %74  ;;  %vm270_vm2 = vcmp.eq.s32.totalorder %v839_v15, %v224_v9 }
  0xa0   :  { %v816_v55 = vsub.f32 %v707_v31, %v75_v51  ;;  %v286_v29 = vsel %vm270_vm2, %v748_v48, 0.0 }
  0xa1   :  { %v512_v57 = vpop.eup %511  ;;  %v302_v33 = vsel %vm27_vm0, %v286_v29, 0.0 }
  0xa2   :  { %v514_v58 = vpop.eup %513  ;;  %v122_v26 = vmul.f32 1.442695, %v816_v55  ;;  %v166_v59 = vsel %vm27_vm0, %v512_v57, 0.0 }
  0xa3   :  { %v160_v61 = vsel %vm27_vm0, %v514_v58, 0.0  ;;  %167 = vadd.xlane.f32.xlu0 %v166_v59  ;;  %v516_v63 = vpop.eup %515 }
  0xa4   :  { %517 = vpow2.f32 %v122_v26  ;;  %161 = vadd.xlane.f32.xlu1 %v160_v61  ;;  %v163_v2 = vsel %vm27_vm0, %v516_v63, 0.0 }
  0xa5   :  { %155 = vadd.xlane.f32.xlu2 %v154_v62 }
  0xa6   :  { %v233_v14 = vpop.permute.xlu2 %232 }
  0xa7   :  { %vm273_vm5 = vcmp.eq.s32.totalorder %v839_v15, %v233_v14 }
  0xa8   :  { %v289_v48 = vsel %vm273_vm5, %v756_v54, 0.0 }
  0xa9   :  { %v311_v37 = vsel %vm27_vm0, %v289_v48, 0.0 }
  0xaa   :  { %v518_v1 = vpop.eup %517 }
  0xab   :  { %v169_v31 = vsel %vm27_vm0, %v518_v1, 0.0 }
  0xac   :  { %170 = vadd.xlane.f32.xlu1 %v169_v31 }
  0xad   :  { %164 = vadd.xlane.f32.xlu2 %v163_v2 }
  0xae   :  { %v230_v10 = vpop.permute.xlu1 %229  ;;  %v236_v18 = vpop.permute.xlu2 %235 }
  0xaf   :  { %vm272_vm4 = vcmp.eq.s32.totalorder %v839_v15, %v230_v10  ;;  %vm274_vm7 = vcmp.eq.s32.totalorder %v839_v15, %v236_v18 }
  0xb0   :  { %v288_v19 = vsel %vm272_vm4, %v745_v46, 0.0  ;;  %v290_v20 = vsel %vm274_vm7, %v764_v60, 0.0 }
  0xb1   :  { %v308_v21 = vsel %vm27_vm0, %v288_v19, 0.0  ;;  %v314_v42 = vsel %vm27_vm0, %v290_v20, 0.0 }
  0xb2   :  { %v227_v12 = vpop.permute.xlu0 %226 }
  0xb3   :  { %vm271_vm1 = vcmp.eq.s32.totalorder %v839_v15, %v227_v12 }
  0xb4   :  { %v287_v22 = vsel %vm271_vm1, %v759_v56, 0.0 }
  0xb5   :  { %v305_v13 = vsel %vm27_vm0, %v287_v22, 0.0 }
  0xb6   :  { %v239_v17 = vpop.permute.xlu1 %238  ;;  %v242_v30 = vpop.permute.xlu2 %241 }
  0xb7   :  { %256 = vperm.xlu0 %485, %v215_v3   ;;  %vm275_vm3 = vcmp.eq.s32.totalorder %v839_v15, %v239_v17  ;;  %vm276_vm8 = vcmp.eq.s32.totalorder %v839_v15, %v242_v30 }
  0xb8   :  { %v291_v32 = vsel %vm275_vm3, %v753_v53, 0.0  ;;  %v292_v41 = vsel %vm276_vm8, %v774_v6, 0.0 }
  0xb9   :  { %v317_v56 = vsel %vm27_vm0, %v291_v32, 0.0  ;;  %v320_v43 = vsel %vm27_vm0, %v292_v41, 0.0 }
  0xba   :  { %v248_v35 = vpop.permute.xlu0 %247 }
  0xbb   :  { %vm278_vm6 = vcmp.eq.s32.totalorder %v839_v15, %v248_v35 }
  0xbc   :  { %v294_v36 = vsel %vm278_vm6, %v771_v5, 0.0 }
  0xbd   :  { %v326_v46 = vsel %vm27_vm0, %v294_v36, 0.0 }
  0xbe   :  { %v245_v24 = vpop.permute.xlu1 %244  ;;  %v251_v39 = vpop.permute.xlu2 %250 }
  0xbf   :  { %265 = vperm.xlu0 %485, %v218_v4   ;;  %vm277_vm9 = vcmp.eq.s32.totalorder %v839_v15, %v245_v24  ;;  %vm279_vm10 = vcmp.eq.s32.totalorder %v839_v15, %v251_v39 }
  0xc0   :  { %v293_v45 = vsel %vm277_vm9, %v779_v11, 0.0  ;;  %v295_v60 = vsel %vm279_vm10, %v789_v28, 0.0 }
  0xc1   :  { %v323_v25 = vsel %vm27_vm0, %v293_v45, 0.0  ;;  %v329_v6 = vsel %vm27_vm0, %v295_v60, 0.0 }
  0xc5   :  { %259 = vperm.xlu2 %484, %v216_v0   ;;  %262 = vperm.xlu1 %486, %v217_v7  }
  0xc6   :  { %v254_v53 = vpop.permute.xlu1 %253 }
  0xc7   :  { %vm280_vm11 = vcmp.eq.s32.totalorder %v839_v15, %v254_v53 }
  0xc8   :  { %v296_v51 = vsel %vm280_vm11, %v794_v34, 0.0 }
  0xc9   :  { %v332_v52 = vsel %vm27_vm0, %v296_v51, 0.0 }
  0xcd   :  { %268 = vperm.xlu2 %484, %v219_v8  }
  0xe9   :  { %306 = vadd.xlane.f32.xlu0 %v305_v13 }
  0xef   :  { %303 = vadd.xlane.f32.xlu1 %v302_v33 }
  0xf1   :  { %318 = vadd.xlane.f32.xlu0 %v317_v56 }
  0xf6   :  { %309 = vadd.xlane.f32.xlu2 %v308_v21  ;;  %v862_v54 = vpop.xlane.xlu0 %131 }
  0xf7   :  { %312 = vadd.xlane.f32.xlu1 %v311_v37  ;;  %v126_v5 = vpop.xlane.xlu1 %125 }
  0xf9   :  { %327 = vadd.xlane.f32.xlu0 %v326_v46 }
  0xfe   :  { %315 = vadd.xlane.f32.xlu2 %v314_v42  ;;  %v141_v47 = vpop.xlane.xlu0 %140 }
  0xff   :  { %321 = vadd.xlane.f32.xlu1 %v320_v43  ;;  %v135_v27 = vpop.xlane.xlu1 %134 }
 0x100   :  { %v129_v44 = vpop.xlane.xlu2 %128 }
 0x101   :  { %519 = vlog2.f32 %v129_v44 }
 0x102   :  { %521 = vlog2.f32 %v126_v5 }
 0x103   :  { %523 = vlog2.f32 %v141_v47 }
 0x104   :  { %525 = vlog2.f32 %v862_v54 }
 0x105   :  { %527 = vlog2.f32 %v135_v27 }
 0x106   :  { %324 = vadd.xlane.f32.xlu2 %v323_v25  ;;  %v150_v57 = vpop.xlane.xlu0 %149 }
 0x107   :  { %330 = vadd.xlane.f32.xlu1 %v329_v6  ;;  %v144_v58 = vpop.xlane.xlu1 %143 }
 0x108   :  { %v138_v50 = vpop.xlane.xlu2 %137 }
 0x10e   :  { %333 = vadd.xlane.f32.xlu2 %v332_v52  ;;  %v878_v28 = vpop.xlane.xlu0 %158 }
 0x10f   :  { %v882_v59 = vpop.xlane.xlu1 %152 }
 0x110   :  { %v876_v11 = vpop.xlane.xlu2 %146 }
 0x116   :  { %v886_v62 = vpop.xlane.xlu0 %167 }
 0x117   :  { %v888_v63 = vpop.xlane.xlu1 %161 }
 0x118   :  { %v880_v26 = vpop.xlane.xlu2 %155 }
 0x11f   :  { %v896_v0 = vpop.xlane.xlu1 %170 }
 0x120   :  { %v884_v61 = vpop.xlane.xlu2 %164 }
 0x128   :  { %v260_v34 = vpop.permute.xlu2 %259 }
 0x129   :  { %vm282_vm12 = vcmp.eq.s32.totalorder %v839_v15, %v260_v34  ;;  %v257_v1 = vpop.permute.xlu0 %256 }
 0x12a   :  { %v298_v31 = vsel %vm282_vm12, %v804_v40, 0.0  ;;  %vm281_vm13 = vcmp.eq.s32.totalorder %v839_v15, %v257_v1 }
 0x12b   :  { %v338_v2 = vsel %vm27_vm0, %v298_v31, 0.0  ;;  %v297_v3 = vsel %vm281_vm13, %v786_v23, 0.0 }
 0x12c   :  { %339 = vadd.xlane.f32.xlu1 %v338_v2  ;;  %v335_v4 = vsel %vm27_vm0, %v297_v3, 0.0 }
 0x12d   :  { %336 = vadd.xlane.f32.xlu0 %v335_v4 }
 0x130   :  { %v269_v7 = vpop.permute.xlu2 %268 }
 0x131   :  { %vm285_vm14 = vcmp.eq.s32.totalorder %v839_v15, %v269_v7  ;;  %v266_v8 = vpop.permute.xlu0 %265 }
 0x132   :  { %v301_v9 = vsel %vm285_vm14, %v816_v55, 0.0  ;;  %vm284_vm15 = vcmp.eq.s32.totalorder %v839_v15, %v266_v8  ;;  %v520_v55 = vpop.eup %519 }
 0x133   :  { %v347_v40 = vsel %vm27_vm0, %v301_v9, 0.0  ;;  %v300_v10 = vsel %vm284_vm15, %v801_v38, 0.0  ;;  %v175_v17 = vmul.f32 0.6931472, %v520_v55  ;;  %v522_v13 = vpop.eup %521 }
 0x134   :  { %348 = vadd.xlane.f32.xlu1 %v347_v40  ;;  %v344_v23 = vsel %vm27_vm0, %v300_v10, 0.0  ;;  %v524_v24 = vpop.eup %523  ;;  %v173_v29 = vmul.f32 0.6931472, %v522_v13 }
 0x135   :  { %345 = vadd.xlane.f32.xlu0 %v344_v23  ;;  %v526_v32 = vpop.eup %525 }
 0x136   :  { %v528_v19 = vpop.eup %527  ;;  %v177_v21 = vmul.f32 0.6931472, %v526_v32 }
 0x137   :  { %v263_v14 = vpop.permute.xlu1 %262  ;;  %v179_v46 = vmul.f32 0.6931472, %v528_v19 }
 0x138   :  { %vm283_vm1 = vcmp.eq.s32.totalorder %v839_v15, %v263_v14  ;;  %v183_v15 = vmul.f32 0.6931472, %v524_v24 }
 0x139   :  { %v299_v16 = vsel %vm283_vm1, %v810_v49, 0.0 }
 0x13a   :  { %v341_v12 = vsel %vm27_vm0, %v299_v16, 0.0  ;;  %vm462_vm0 = vcmask 7168  }
 0x13b   :  { %342 = vadd.xlane.f32.xlu2 %v341_v12 }
 0x15c   :  { %v307_v18 = vpop.xlane.xlu0 %306 }
 0x15d   :  { %v351_v22 = vsub.f32 %v307_v18, %v175_v17 }
 0x15f   :  { %v368_v38 = vmul.f32 1.442695, %v351_v22 }
 0x161   :  { %529 = vpow2.f32 %v368_v38 }
 0x162   :  { %531 = vlog2.f32 %v150_v57  ;;  %v304_v49 = vpop.xlane.xlu1 %303 }
 0x163   :  { %v350_v30 = vsub.f32 %v304_v49, %v173_v29  ;;  %533 = vlog2.f32 %v138_v50 }
 0x164   :  { %v319_v33 = vpop.xlane.xlu0 %318 }
 0x165   :  { %v366_v35 = vmul.f32 1.442695, %v350_v30  ;;  %v355_v56 = vsub.f32 %v319_v33, %v183_v15 }
 0x167   :  { %v530_v48 = vpop.eup %529  ;;  %535 = vpow2.f32 %v366_v35  ;;  %v376_v53 = vmul.f32 1.442695, %v355_v56 }
 0x168   :  { %v532_v36 = vpop.eup %531  ;;  %537 = vlog2.f32 %v144_v58  ;;  %v399_v37 = vsub.f32 1.0, %v530_v48 }
 0x169   :  { %v310_v39 = vpop.xlane.xlu2 %309  ;;  %539 = vpow2.f32 %v376_v53  ;;  %v189_v42 = vmul.f32 0.6931472, %v532_v36  ;;  %v534_v44 = vpop.eup %533 }
 0x16a   :  { %v352_v20 = vsub.f32 %v310_v39, %v177_v21  ;;  %v415_v54 = vmul.f32 %v399_v37, %v399_v37  ;;  %v313_v41 = vpop.xlane.xlu1 %312  ;;  %v181_v57 = vmul.f32 0.6931472, %v534_v44 }
 0x16b   :  { %v353_v43 = vsub.f32 %v313_v41, %v179_v46 }
 0x16c   :  { %v370_v5 = vmul.f32 1.442695, %v352_v20  ;;  %v431_v45 = vmul.f32 %v415_v54, %v351_v22  ;;  %v328_v47 = vpop.xlane.xlu0 %327 }
 0x16d   :  { %v536_v60 = vpop.eup %535  ;;  %v372_v25 = vmul.f32 1.442695, %v353_v43  ;;  %v358_v6 = vsub.f32 %v328_v47, %v189_v42 }
 0x16e   :  { %541 = vpow2.f32 %v370_v5  ;;  %v538_v27 = vpop.eup %537  ;;  %v447_v50 = vsub.f32 0.0, %v431_v45  ;;  %v398_v51 = vsub.f32 1.0, %v536_v60 }
 0x16f   :  { %543 = vlog2.f32 %v876_v11  ;;  %v540_v52 = vpop.eup %539  ;;  %v382_v58 = vmul.f32 1.442695, %v358_v6  ;;  %v185_v2 = vmul.f32 0.6931472, %v538_v27 }
 0x170   :  { %545 = vpow2.f32 %v372_v25  ;;  %464 = vst.msk [vmem:[%s982_s2 + $0x8] sm:$0xff] %vm462_vm0, %v447_v50  ;;  %v414_v34 = vmul.f32 %v398_v51, %v398_v51  ;;  %v403_v1 = vsub.f32 1.0, %v540_v52 }
 0x171   :  { %547 = vlog2.f32 %v882_v59  ;;  %v316_v31 = vpop.xlane.xlu2 %315 }
 0x172   :  { %549 = vpow2.f32 %v382_v58  ;;  %v354_v3 = vsub.f32 %v316_v31, %v181_v57  ;;  %v430_v11 = vmul.f32 %v414_v34, %v350_v30  ;;  %v419_v4 = vmul.f32 %v403_v1, %v403_v1  ;;  %v322_v7 = vpop.xlane.xlu1 %321 }
 0x173   :  { %v356_v40 = vsub.f32 %v322_v7, %v185_v2 }
 0x174   :  { %v542_v8 = vpop.eup %541  ;;  %v374_v9 = vmul.f32 1.442695, %v354_v3  ;;  %v446_v23 = vsub.f32 0.0, %v430_v11  ;;  %v435_v59 = vmul.f32 %v419_v4, %v355_v56 }
 0x175   :  { %v544_v10 = vpop.eup %543  ;;  %v400_v14 = vsub.f32 1.0, %v542_v8  ;;  %v378_v12 = vmul.f32 1.442695, %v356_v40 }
 0x176   :  { %v546_v16 = vpop.eup %545  ;;  %551 = vpow2.f32 %v374_v9  ;;  %463 = vst.msk [vmem:[%s982_s2] sm:$0xff] %vm462_vm0, %v446_v23  ;;  %v451_v17 = vsub.f32 0.0, %v435_v59  ;;  %v187_v38 = vmul.f32 0.6931472, %v544_v10 }
 0x177   :  { %v548_v55 = vpop.eup %547  ;;  %553 = vlog2.f32 %v880_v26  ;;  %v416_v18 = vmul.f32 %v400_v14, %v400_v14  ;;  %v401_v22 = vsub.f32 1.0, %v546_v16 }
 0x178   :  { %v550_v13 = vpop.eup %549  ;;  %555 = vpow2.f32 %v378_v12  ;;  %468 = vst.msk [vmem:[%s982_s2 + $0x28] sm:$0xff] %vm462_vm0, %v451_v17  ;;  %v191_v15 = vmul.f32 0.6931472, %v548_v55 }
 0x179   :  { %v432_v24 = vmul.f32 %v416_v18, %v352_v20  ;;  %v417_v29 = vmul.f32 %v401_v22, %v401_v22  ;;  %v406_v49 = vsub.f32 1.0, %v550_v13  ;;  %v325_v26 = vpop.xlane.xlu2 %324 }
 0x17a   :  { %v357_v30 = vsub.f32 %v325_v26, %v187_v38  ;;  %v331_v56 = vpop.xlane.xlu1 %330 }
 0x17b   :  { %v448_v32 = vsub.f32 0.0, %v432_v24  ;;  %v433_v33 = vmul.f32 %v417_v29, %v353_v43  ;;  %v422_v35 = vmul.f32 %v406_v49, %v406_v49  ;;  %v359_v21 = vsub.f32 %v331_v56, %v191_v15 }
 0x17c   :  { %v552_v19 = vpop.eup %551  ;;  %v380_v48 = vmul.f32 1.442695, %v357_v30 }
 0x17d   :  { %v554_v53 = vpop.eup %553  ;;  %465 = vst.msk [vmem:[%s982_s2 + $0x10] sm:$0xff] %vm462_vm0, %v448_v32  ;;  %v449_v36 = vsub.f32 0.0, %v433_v33  ;;  %v438_v37 = vmul.f32 %v422_v35, %v358_v6  ;;  %v402_v39 = vsub.f32 1.0, %v552_v19  ;;  %v384_v20 = vmul.f32 1.442695, %v359_v21 }
 0x17e   :  { %v556_v46 = vpop.eup %555  ;;  %557 = vpow2.f32 %v380_v48  ;;  %v193_v5 = vmul.f32 0.6931472, %v554_v53 }
 0x17f   :  { %466 = vst.msk [vmem:[%s982_s2 + $0x18] sm:$0xff] %vm462_vm0, %v449_v36  ;;  %v454_v54 = vsub.f32 0.0, %v438_v37  ;;  %v418_v41 = vmul.f32 %v402_v39, %v402_v39  ;;  %v404_v42 = vsub.f32 1.0, %v556_v46  ;;  %559 = vpow2.f32 %v384_v20 }
 0x181   :  { %471 = vst.msk [vmem:[%s982_s2 + $0x40] sm:$0xff] %vm462_vm0, %v454_v54  ;;  %v434_v43 = vmul.f32 %v418_v41, %v354_v3  ;;  %v420_v44 = vmul.f32 %v404_v42, %v404_v42  ;;  %v334_v45 = vpop.xlane.xlu2 %333 }
 0x182   :  { %v360_v47 = vsub.f32 %v334_v45, %v193_v5 }
 0x183   :  { %v450_v60 = vsub.f32 0.0, %v434_v43  ;;  %v436_v25 = vmul.f32 %v420_v44, %v356_v40 }
 0x184   :  { %v558_v6 = vpop.eup %557  ;;  %v386_v27 = vmul.f32 1.442695, %v360_v47 }
 0x185   :  { %467 = vst.msk [vmem:[%s982_s2 + $0x20] sm:$0xff] %vm462_vm0, %v450_v60  ;;  %v452_v50 = vsub.f32 0.0, %v436_v25  ;;  %v405_v51 = vsub.f32 1.0, %v558_v6  ;;  %v560_v52 = vpop.eup %559 }
 0x186   :  { %561 = vpow2.f32 %v386_v27  ;;  %v407_v58 = vsub.f32 1.0, %v560_v52 }
 0x187   :  { %469 = vst.msk [vmem:[%s982_s2 + $0x30] sm:$0xff] %vm462_vm0, %v452_v50  ;;  %v421_v57 = vmul.f32 %v405_v51, %v405_v51  ;;  %563 = vlog2.f32 %v888_v63 }
 0x188   :  { %v423_v1 = vmul.f32 %v407_v58, %v407_v58  ;;  %565 = vlog2.f32 %v878_v28 }
 0x189   :  { %v437_v34 = vmul.f32 %v421_v57, %v357_v30  ;;  %567 = vlog2.f32 %v896_v0 }
 0x18a   :  { %v439_v2 = vmul.f32 %v423_v1, %v359_v21  ;;  %569 = vlog2.f32 %v886_v62 }
 0x18b   :  { %v453_v31 = vsub.f32 0.0, %v437_v34 }
 0x18c   :  { %v562_v3 = vpop.eup %561  ;;  %v455_v11 = vsub.f32 0.0, %v439_v2 }
 0x18d   :  { %470 = vst.msk [vmem:[%s982_s2 + $0x38] sm:$0xff] %vm462_vm0, %v453_v31  ;;  %v408_v4 = vsub.f32 1.0, %v562_v3  ;;  %v564_v40 = vpop.eup %563 }
 0x18e   :  { %472 = vst.msk [vmem:[%s982_s2 + $0x48] sm:$0xff] %vm462_vm0, %v455_v11  ;;  %v566_v10 = vpop.eup %565  ;;  %v197_v23 = vmul.f32 0.6931472, %v564_v40 }
 0x18f   :  { %v424_v7 = vmul.f32 %v408_v4, %v408_v4  ;;  %v195_v14 = vmul.f32 0.6931472, %v566_v10  ;;  %v568_v17 = vpop.eup %567 }
 0x190   :  { %v570_v22 = vpop.eup %569  ;;  %v203_v28 = vmul.f32 0.6931472, %v568_v17 }
 0x191   :  { %v440_v8 = vmul.f32 %v424_v7, %v360_v47  ;;  %v201_v38 = vmul.f32 0.6931472, %v570_v22 }
 0x193   :  { %v456_v9 = vsub.f32 0.0, %v440_v8 }
 0x195   :  { %473 = vst.msk [vmem:[%s982_s2 + $0x50] sm:$0xff] %vm462_vm0, %v456_v9 }
 0x19f   :  { %v340_v59 = vpop.xlane.xlu1 %339 }
 0x1a0   :  { %v362_v16 = vsub.f32 %v340_v59, %v197_v23  ;;  %v337_v12 = vpop.xlane.xlu0 %336 }
 0x1a1   :  { %v361_v63 = vsub.f32 %v337_v12, %v195_v14 }
 0x1a2   :  { %v390_v55 = vmul.f32 1.442695, %v362_v16 }
 0x1a3   :  { %v388_v18 = vmul.f32 1.442695, %v361_v63 }
 0x1a4   :  { %571 = vpow2.f32 %v390_v55 }
 0x1a5   :  { %573 = vlog2.f32 %v884_v61 }
 0x1a6   :  { %575 = vpow2.f32 %v388_v18 }
 0x1a7   :  { %v349_v13 = vpop.xlane.xlu1 %348 }
 0x1a8   :  { %v365_v0 = vsub.f32 %v349_v13, %v203_v28  ;;  %v346_v24 = vpop.xlane.xlu0 %345 }
 0x1a9   :  { %v364_v49 = vsub.f32 %v346_v24, %v201_v38 }
 0x1aa   :  { %v572_v29 = vpop.eup %571  ;;  %v396_v62 = vmul.f32 1.442695, %v365_v0 }
 0x1ab   :  { %v574_v26 = vpop.eup %573  ;;  %v410_v15 = vsub.f32 1.0, %v572_v29  ;;  %v394_v32 = vmul.f32 1.442695, %v364_v49 }
 0x1ac   :  { %v576_v30 = vpop.eup %575  ;;  %577 = vpow2.f32 %v396_v62  ;;  %v199_v56 = vmul.f32 0.6931472, %v574_v26 }
 0x1ad   :  { %v426_v33 = vmul.f32 %v410_v15, %v410_v15  ;;  %v409_v35 = vsub.f32 1.0, %v576_v30  ;;  %579 = vpow2.f32 %v394_v32 }
 0x1ae   :  { %v343_v48 = vpop.xlane.xlu2 %342 }
 0x1af   :  { %v442_v19 = vmul.f32 %v426_v33, %v362_v16  ;;  %v425_v61 = vmul.f32 %v409_v35, %v409_v35  ;;  %v363_v21 = vsub.f32 %v343_v48, %v199_v56 }
 0x1b1   :  { %v458_v53 = vsub.f32 0.0, %v442_v19  ;;  %v441_v36 = vmul.f32 %v425_v61, %v361_v63  ;;  %v392_v39 = vmul.f32 1.442695, %v363_v21 }
 0x1b2   :  { %v578_v37 = vpop.eup %577 }
 0x1b3   :  { %475 = vst.msk [vmem:[%s982_s2 + $0x60] sm:$0xff] %vm462_vm0, %v458_v53  ;;  %v457_v46 = vsub.f32 0.0, %v441_v36  ;;  %v413_v20 = vsub.f32 1.0, %v578_v37  ;;  %v580_v54 = vpop.eup %579  ;;  %581 = vpow2.f32 %v392_v39 }
 0x1b4   :  { %v412_v42 = vsub.f32 1.0, %v580_v54 }
 0x1b5   :  { %474 = vst.msk [vmem:[%s982_s2 + $0x58] sm:$0xff] %vm462_vm0, %v457_v46  ;;  %v429_v41 = vmul.f32 %v413_v20, %v413_v20 }
 0x1b6   :  { %v428_v43 = vmul.f32 %v412_v42, %v412_v42 }
 0x1b7   :  { %v445_v5 = vmul.f32 %v429_v41, %v365_v0 }
 0x1b8   :  { %v444_v45 = vmul.f32 %v428_v43, %v364_v49 }
 0x1b9   :  { %v461_v44 = vsub.f32 0.0, %v445_v5  ;;  %v582_v47 = vpop.eup %581 }
 0x1ba   :  { %v460_v60 = vsub.f32 0.0, %v444_v45  ;;  %v411_v25 = vsub.f32 1.0, %v582_v47 }
 0x1bb   :  { %478 = vst.msk [vmem:[%s982_s2 + $0x78] sm:$0xff] %vm462_vm0, %v461_v44 }
 0x1bc   :  { %477 = vst.msk [vmem:[%s982_s2 + $0x70] sm:$0xff] %vm462_vm0, %v460_v60  ;;  %v427_v6 = vmul.f32 %v411_v25, %v411_v25 }
 0x1be   :  { %v443_v27 = vmul.f32 %v427_v6, %v363_v21 }
 0x1c0   :  { %v459_v50 = vsub.f32 0.0, %v443_v27 }
 0x1c2   :  { %476 = vst.msk [vmem:[%s982_s2 + $0x68] sm:$0xff] %vm462_vm0, %v459_v50 }

</bundles_post_ra>
